<compile_context>
chip_gen: v5e
topology: v5e:2x2
jax: 0.10.0
libtpu: 0.0.40
codegen_flags: <defaults>
</compile_context>

<pallas_src>
import functools

import jax
import jax.numpy as jnp
from jax import lax
from jax.experimental import pallas as pl
from jax.experimental.pallas import tpu as pltpu


def _round_up(n, m):
    return ((n + m - 1) // m) * m


def _mlp_kernel(x_ref, w1_ref, b1_ref, w2_ref, b2_ref, w3_ref, b3_ref, o_ref,
                *, sub, n_strips):
    # Weights / biases are small and VMEM-resident; hoist loads out of the strip loop.
    w1 = w1_ref[...]
    w2 = w2_ref[...]
    w3 = w3_ref[...]
    b1 = b1_ref[...].astype(jnp.float32)
    b2 = b2_ref[...].astype(jnp.float32)
    b3 = b3_ref[...].astype(jnp.float32)

    def body(s, carry):
        r0 = pl.multiple_of(s * sub, sub)
        x = x_ref[pl.ds(r0, sub), :]                                   # [sub, 64]

        # fc1 + ReLU  (f32 accumulate, bias/ReLU on the f32 accumulator)
        h1 = jnp.dot(x, w1, preferred_element_type=jnp.float32)
        h1 = jnp.maximum(h1 + b1, 0.0)                                 # [sub, 32] f32

        # fc2 + ReLU
        h2 = jnp.dot(h1.astype(w2.dtype), w2, preferred_element_type=jnp.float32)
        h2 = jnp.maximum(h2 + b2, 0.0)                                 # [sub, 16] f32

        # fc3 (logits, no activation)
        y = jnp.dot(h2.astype(w3.dtype), w3, preferred_element_type=jnp.float32)
        y = y + b3                                                     # [sub, classnum]

        o_ref[pl.ds(r0, sub), :] = y.astype(o_ref.dtype)
        return carry

    lax.fori_loop(0, n_strips, body, None, unroll=(n_strips <= 8))


@functools.partial(jax.jit, static_argnames=("block_b", "use_bf16"))
def classifier_forward(x, params, *, block_b=4096, use_bf16=False):
    """x: [B, 64]; params: dict of w1,b1,w2,b2,w3,b3 (w: [in,out], b: [1,out])."""
    B, F = x.shape
    w1, b1 = params["w1"], params["b1"]
    w2, b2 = params["w2"], params["b2"]
    w3, b3 = params["w3"], params["b3"]
    classnum = w3.shape[1]

    if use_bf16:
        # Weights are tiny and resident: casting them is free.  x should ideally arrive
        # as bf16 from its producer; under jit a needed convert fuses upstream rather
        # than being a standalone HBM pass.
        w1, w2, w3 = (w.astype(jnp.bfloat16) for w in (w1, w2, w3))
        if x.dtype != jnp.bfloat16:
            x = x.astype(jnp.bfloat16)

    # Batch tile: large (amortize per-step overhead), multiple of the 512-row strip so
    # the in-kernel strip loop divides evenly.  No wrapper padding: Pallas masks the
    # overhanging last block.
    TB = min(_round_up(block_b, 8), _round_up(B, 8))
    if TB > 512:
        TB = _round_up(TB, 512)
        SUB = 512
    else:
        SUB = TB
    n_strips = TB // SUB
    grid = (pl.cdiv(B, TB),)

    # VMEM budget: double-buffered x tile + double-buffered output tile (lane-padded to
    # 128) + small resident weights/intermediates; capped at 48 MiB (fits v7x physical).
    x_bytes = jnp.dtype(x.dtype).itemsize
    o_bytes = 4  # f32 logits
    out_lanes = max(_round_up(classnum, 128), 128)
    vmem_needed = 2 * TB * F * x_bytes + 2 * TB * out_lanes * o_bytes + (4 << 20)
    vmem_limit = int(min(max(vmem_needed, 16 << 20), 48 << 20))

    weight_bytes = sum(int(a.size) * jnp.dtype(a.dtype).itemsize
                       for a in (w1, b1, w2, b2, w3, b3))
    cost = pl.CostEstimate(
        flops=2 * B * (64 * 32 + 32 * 16 + 16 * classnum),
        transcendentals=0,
        bytes_accessed=B * (F * x_bytes + classnum * o_bytes) + weight_bytes,
    )

    const = lambda i: (0, 0)  # weights/biases: same block every step -> stay in VMEM

    kernel = functools.partial(_mlp_kernel, sub=SUB, n_strips=n_strips)

    out = pl.pallas_call(
        kernel,
        out_shape=jax.ShapeDtypeStruct((B, classnum), jnp.float32),
        grid=grid,
        in_specs=[
            pl.BlockSpec((TB, F), lambda i: (i, 0)),       # x tile, pipelined
            pl.BlockSpec(w1.shape, const),
            pl.BlockSpec(b1.shape, const),
            pl.BlockSpec(w2.shape, const),
            pl.BlockSpec(b2.shape, const),
            pl.BlockSpec(w3.shape, const),
            pl.BlockSpec(b3.shape, const),
        ],
        out_specs=pl.BlockSpec((TB, classnum), lambda i: (i, 0)),
        compiler_params=pltpu.CompilerParams(
            dimension_semantics=("parallel",),             # v7x: shard batch across 2 TCs
            vmem_limit_bytes=vmem_limit,
        ),
        cost_estimate=cost,
    )(x, w1, b1, w2, b2, w3, b3)

    return out


def init_params(key, classnum=10):
    """Deterministic init mimicking nn.Linear's U(-1/sqrt(fan_in), 1/sqrt(fan_in))."""
    dims = [(64, 32), (32, 16), (16, classnum)]
    params = {}
    for i, (fan_in, fan_out) in enumerate(dims, start=1):
        key, kw, kb = jax.random.split(key, 3)
        bound = 1.0 / (fan_in ** 0.5)
        # stored as [in, out] so the kernel does x @ W (== x @ pytorch_weight.T)
        params[f"w{i}"] = jax.random.uniform(
            kw, (fan_in, fan_out), jnp.float32, minval=-bound, maxval=bound)
        params[f"b{i}"] = jax.random.uniform(
            kb, (1, fan_out), jnp.float32, minval=-bound, maxval=bound)
    return params


def reference_forward(x, params):
    h1 = jnp.maximum(x @ params["w1"] + params["b1"], 0.0)
    h2 = jnp.maximum(h1 @ params["w2"] + params["b2"], 0.0)
    return h2 @ params["w3"] + params["b3"]


if __name__ == "__main__":
    key = jax.random.PRNGKey(0)
    key, kx, kx2, kx3 = jax.random.split(key, 4)

    classnum = 10
    params = init_params(key, classnum=classnum)

    # --- small batch: single grid step, single strip (TB rounded to 8) ---
    B = 8
    x = jax.random.normal(kx, (B, 64), jnp.float32)
    out = jax.block_until_ready(classifier_forward(x, params))
    ref = reference_forward(x, params)
    assert out.shape == (B, classnum), out.shape
    assert jnp.allclose(out, ref, atol=1e-4, rtol=1e-4), "f32 mismatch vs JAX reference"

    # --- ragged batch: multiple pipelined grid steps + masked overhanging last block ---
    B2 = 200
    x2 = jax.random.normal(kx2, (B2, 64), jnp.float32)
    out2 = jax.block_until_ready(classifier_forward(x2, params, block_b=64))
    ref2 = reference_forward(x2, params)
    assert out2.shape == (B2, classnum), out2.shape
    assert jnp.allclose(out2, ref2, atol=1e-4, rtol=1e-4), "tiled f32 mismatch"

    # --- larger batch: exercises the 512-row strip loop + overhang (TB=1536, 3 strips) ---
    B3 = 1200
    x3 = jax.random.normal(kx3, (B3, 64), jnp.float32)
    out3 = jax.block_until_ready(classifier_forward(x3, params))
    ref3 = reference_forward(x3, params)
    assert out3.shape == (B3, classnum), out3.shape
    assert jnp.allclose(out3, ref3, atol=1e-4, rtol=1e-4), "strip-mined f32 mismatch"

    # --- bf16 input/weight path (HBM-traffic optimization), f32 accumulate ---
    out_bf16 = jax.block_until_ready(classifier_forward(x3, params, use_bf16=True))
    assert out_bf16.shape == (B3, classnum), out_bf16.shape
    assert jnp.allclose(out_bf16, ref3, atol=7.5e-2, rtol=7.5e-2), "bf16 path diverged"

    print("KERNEL_OK")
</pallas_src>

<mosaic_0001>
module attributes {stable_mosaic.version = 11 : i64} {
  func.func @_mlp_kernel(%arg0: i32, %arg1: memref<8x64xf32, #tpu.memory_space<vmem>>, %arg2: memref<64x32xf32, #tpu.memory_space<vmem>>, %arg3: memref<1x32xf32, #tpu.memory_space<vmem>>, %arg4: memref<32x16xf32, #tpu.memory_space<vmem>>, %arg5: memref<1x16xf32, #tpu.memory_space<vmem>>, %arg6: memref<16x10xf32, #tpu.memory_space<vmem>>, %arg7: memref<1x10xf32, #tpu.memory_space<vmem>>, %arg8: memref<8x10xf32, #tpu.memory_space<vmem>>) attributes {dimension_semantics = [#tpu.dimension_semantics<parallel>], iteration_bounds = array<i64: 1>, scalar_prefetch = 0 : i64, scratch_operands = 0 : i64, tpu.core_type = #tpu.core_type<tc>, window_params = [{transform_indices = @transform_0, window_bounds = array<i64: 8, 64>}, {pipeline_mode = #tpu.pipeline_mode<synchronous>, transform_indices = @transform_1, window_bounds = array<i64: 64, 32>}, {pipeline_mode = #tpu.pipeline_mode<synchronous>, transform_indices = @transform_2, window_bounds = array<i64: 1, 32>}, {pipeline_mode = #tpu.pipeline_mode<synchronous>, transform_indices = @transform_3, window_bounds = array<i64: 32, 16>}, {pipeline_mode = #tpu.pipeline_mode<synchronous>, transform_indices = @transform_4, window_bounds = array<i64: 1, 16>}, {pipeline_mode = #tpu.pipeline_mode<synchronous>, transform_indices = @transform_5, window_bounds = array<i64: 16, 10>}, {pipeline_mode = #tpu.pipeline_mode<synchronous>, transform_indices = @transform_6, window_bounds = array<i64: 1, 10>}, {transform_indices = @transform_7, window_bounds = array<i64: 8, 10>}]} {
    %c0 = arith.constant 0 : index
    %c0_0 = arith.constant 0 : index
    %0 = vector.load %arg2[%c0, %c0_0] : memref<64x32xf32, #tpu.memory_space<vmem>>, vector<64x32xf32>
    %c0_1 = arith.constant 0 : index
    %c0_2 = arith.constant 0 : index
    %1 = vector.load %arg4[%c0_1, %c0_2] : memref<32x16xf32, #tpu.memory_space<vmem>>, vector<32x16xf32>
    %c0_3 = arith.constant 0 : index
    %c0_4 = arith.constant 0 : index
    %2 = vector.load %arg6[%c0_3, %c0_4] : memref<16x10xf32, #tpu.memory_space<vmem>>, vector<16x10xf32>
    %c0_5 = arith.constant 0 : index
    %c0_6 = arith.constant 0 : index
    %3 = vector.load %arg3[%c0_5, %c0_6] : memref<1x32xf32, #tpu.memory_space<vmem>>, vector<1x32xf32>
    %c0_7 = arith.constant 0 : index
    %c0_8 = arith.constant 0 : index
    %4 = vector.load %arg5[%c0_7, %c0_8] : memref<1x16xf32, #tpu.memory_space<vmem>>, vector<1x16xf32>
    %c0_9 = arith.constant 0 : index
    %c0_10 = arith.constant 0 : index
    %5 = vector.load %arg7[%c0_9, %c0_10] : memref<1x10xf32, #tpu.memory_space<vmem>>, vector<1x10xf32>
    %c0_i32 = arith.constant 0 : i32
    %c8_i32 = arith.constant 8 : i32
    %6 = arith.muli %c0_i32, %c8_i32 : i32
    %7 = tpu.assume_multiple %6, 8 : i32
    %8 = arith.index_cast %7 : i32 to index
    %c0_11 = arith.constant 0 : index
    %9 = vector.load %arg1[%8, %c0_11] : memref<8x64xf32, #tpu.memory_space<vmem>>, vector<8x64xf32>
    %cst = arith.constant dense<0.000000e+00> : vector<8x32xf32>
    %10 = tpu.matmul %9, %0, %cst {dimension_numbers = #tpu.dot_dimension_numbers<[1], [0], [0], [1], [0, 0, 1, 1], [], []>} : vector<8x64xf32>, vector<64x32xf32>, vector<8x32xf32> -> vector<8x32xf32>
    %11 = vector.broadcast %3 : vector<1x32xf32> to vector<8x32xf32>
    %12 = arith.addf %10, %11 : vector<8x32xf32>
    %cst_12 = arith.constant 0.000000e+00 : f32
    %13 = vector.broadcast %cst_12 : f32 to vector<8x32xf32>
    %14 = arith.maximumf %12, %13 : vector<8x32xf32>
    %cst_13 = arith.constant dense<0.000000e+00> : vector<8x16xf32>
    %15 = tpu.matmul %14, %1, %cst_13 {dimension_numbers = #tpu.dot_dimension_numbers<[1], [0], [0], [1], [0, 0, 1, 1], [], []>} : vector<8x32xf32>, vector<32x16xf32>, vector<8x16xf32> -> vector<8x16xf32>
    %16 = vector.broadcast %4 : vector<1x16xf32> to vector<8x16xf32>
    %17 = arith.addf %15, %16 : vector<8x16xf32>
    %cst_14 = arith.constant 0.000000e+00 : f32
    %18 = vector.broadcast %cst_14 : f32 to vector<8x16xf32>
    %19 = arith.maximumf %17, %18 : vector<8x16xf32>
    %cst_15 = arith.constant dense<0.000000e+00> : vector<8x10xf32>
    %20 = tpu.matmul %19, %2, %cst_15 {dimension_numbers = #tpu.dot_dimension_numbers<[1], [0], [0], [1], [0, 0, 1, 1], [], []>} : vector<8x16xf32>, vector<16x10xf32>, vector<8x10xf32> -> vector<8x10xf32>
    %21 = vector.broadcast %5 : vector<1x10xf32> to vector<8x10xf32>
    %22 = arith.addf %20, %21 : vector<8x10xf32>
    %23 = arith.index_cast %7 : i32 to index
    %c0_16 = arith.constant 0 : index
    %24 = vector.load %arg8[%23, %c0_16] : memref<8x10xf32, #tpu.memory_space<vmem>>, vector<8x10xf32>
    tpu.vector_store %arg8[%23, %c0_16], %22 {strides = array<i32>} : memref<8x10xf32, #tpu.memory_space<vmem>>, vector<8x10xf32>,
    %c1_i32 = arith.constant 1 : i32
    return
  }
  func.func @transform_0(%arg0: i32) -> (i32, i32) {
    %c0_i32 = arith.constant 0 : i32
    %c0_i32_0 = arith.constant 0 : i32
    return %arg0, %c0_i32 : i32, i32
  }
  func.func @transform_1(%arg0: i32) -> (i32, i32) {
    %c0_i32 = arith.constant 0 : i32
    %c0_i32_0 = arith.constant 0 : i32
    %c0_i32_1 = arith.constant 0 : i32
    return %c0_i32, %c0_i32_0 : i32, i32
  }
  func.func @transform_2(%arg0: i32) -> (i32, i32) {
    %c0_i32 = arith.constant 0 : i32
    %c0_i32_0 = arith.constant 0 : i32
    %c0_i32_1 = arith.constant 0 : i32
    return %c0_i32, %c0_i32_0 : i32, i32
  }
  func.func @transform_3(%arg0: i32) -> (i32, i32) {
    %c0_i32 = arith.constant 0 : i32
    %c0_i32_0 = arith.constant 0 : i32
    %c0_i32_1 = arith.constant 0 : i32
    return %c0_i32, %c0_i32_0 : i32, i32
  }
  func.func @transform_4(%arg0: i32) -> (i32, i32) {
    %c0_i32 = arith.constant 0 : i32
    %c0_i32_0 = arith.constant 0 : i32
    %c0_i32_1 = arith.constant 0 : i32
    return %c0_i32, %c0_i32_0 : i32, i32
  }
  func.func @transform_5(%arg0: i32) -> (i32, i32) {
    %c0_i32 = arith.constant 0 : i32
    %c0_i32_0 = arith.constant 0 : i32
    %c0_i32_1 = arith.constant 0 : i32
    return %c0_i32, %c0_i32_0 : i32, i32
  }
  func.func @transform_6(%arg0: i32) -> (i32, i32) {
    %c0_i32 = arith.constant 0 : i32
    %c0_i32_0 = arith.constant 0 : i32
    %c0_i32_1 = arith.constant 0 : i32
    return %c0_i32, %c0_i32_0 : i32, i32
  }
  func.func @transform_7(%arg0: i32) -> (i32, i32) {
    %c0_i32 = arith.constant 0 : i32
    %c0_i32_0 = arith.constant 0 : i32
    return %arg0, %c0_i32 : i32, i32
  }
}

</mosaic_0001>

<bundles_post_ra>
// kernel: classifier_forward.1
= control target key start
LH: loop header
LB: loop body
LE: loop exit
PB: predicated region body
PF: predicated region fallthrough
CT: control target
= control target key end

     0   :  { %s277_s0 = inlined_call_operand.vmem [shape: f32[8,64], index: 0, kind: input, shape index: {}]   ;;  %s278_s1 = inlined_call_operand.vmem [shape: f32[64,32], index: 1, kind: input, shape index: {}]   ;;  %s279_s2 = inlined_call_operand.vmem [shape: f32[1,32], index: 2, kind: input, shape index: {}]   ;;  %s280_s3 = inlined_call_operand.vmem [shape: f32[32,16], index: 3, kind: input, shape index: {}]   ;;  %s281_s4 = inlined_call_operand.vmem [shape: f32[1,16], index: 4, kind: input, shape index: {}]   ;;  %s282_s5 = inlined_call_operand.vmem [shape: f32[16,10], index: 5, kind: input, shape index: {}]   ;;  %s283_s6 = inlined_call_operand.vmem [shape: f32[1,10], index: 6, kind: input, shape index: {}]   ;;  %s284_s7 = inlined_call_operand.hbm [shape: f32[8,10], index: 7, kind: output, shape index: {}]  }
   0x1   :  { %v34_v0 = vld [vmem:[%s278_s1 + $0x38] sm:$0xff]  ;;  %v33_v1 = vld [vmem:[%s278_s1 + $0x30] sm:$0xff]  ;;  %v32_v2 = vld [vmem:[%s278_s1 + $0x28] sm:$0xff] }
   0x2   :  { %60 = vmatpush.msra.mxu0 %v34_v0  ;;  %v31_v3 = vld [vmem:[%s278_s1 + $0x20] sm:$0xff]  ;;  %v38_v4 = vld [vmem:[%s280_s3 + $0x18] sm:$0xff] }
   0x3   :  { %92 = vmatpush.msra.mxu1 %v38_v4 }
   0x4   :  { %61 = vmatpush.msra.mxu0 %v33_v1 }
   0x5   :  { %12 = vsyncpa [#allocation3], 0  ;;  %v30_v5 = vld [vmem:[%s278_s1 + $0x18] sm:$0xff]  ;;  %v29_v6 = vld [vmem:[%s278_s1 + $0x10] sm:$0xff]  ;;  %vm48_vm0 = vcmask 523264   ;;  %vm76_vm1 = vcmask 261120  }
   0x6   :  { %62 = vmatpush.msra.mxu0 %v32_v2  ;;  %v28_v7 = vld [vmem:[%s278_s1 + $0x8] sm:$0xff]  ;;  %v27_v8 = vld [vmem:[%s278_s1] sm:$0xff]  ;;  %v37_v10 = vld [vmem:[%s280_s3 + $0x10] sm:$0xff]  ;;  %vm104_vm2 = vcmask 130048   ;;  %s179_s10 = smov [#allocation2]   ;;  %vm128_vm3 = vcmask 80896  }
   0x7   :  { %v44_v9 = vld [vmem:[%s277_s0] sm:$0xff]  ;;  %93 = vmatpush.msra.mxu1 %v37_v10  ;;  %v36_v11 = vld [vmem:[%s280_s3 + $0x8] sm:$0xff]  ;;  %s135_s11 = sshll.u32 %s179_s10, 4  ;;  %s136_s11 = int_to_ptr.vmem [resolvable:$true] %s135_s11 }
   0x8   :  { %63 = vmatpush.msra.mxu0 %v31_v3  ;;  %v35_v12 = vld [vmem:[%s280_s3] sm:$0xff]  ;;  %v40_v17 = vld [vmem:[%s282_s5 + $0x8] sm:$0xff] }
   0x9   :  { %94 = vmatpush.msra.mxu1 %v36_v11  ;;  %v150_v13 = vld [vmem:[%s279_s2] ss:$0 sm:$0xff]  ;;  %122 = vmatpush.msra.mxu2 %v40_v17 }
   0xa   :  { %64 = vmatpush.msra.mxu0 %v30_v5  ;;  %v39_v18 = vld [vmem:[%s282_s5] sm:$0xff]  ;;  %s137_s5 = sshll.u32 %s284_s7, 4  ;;  %s138_s5 = int_to_ptr.hbm [resolvable:$true] %s137_s5 }
   0xb   :  { %95 = vmatpush.msra.mxu1 %v35_v12  ;;  %123 = vmatpush.msra.mxu2 %v39_v18  ;;  %v151_v19 = vld [vmem:[%s281_s4] ss:$0 sm:$0xff] }
   0xc   :  { %65 = vmatpush.msra.mxu0 %v29_v6  ;;  %v152_v23 = vld [vmem:[%s283_s6] ss:$0 sm:$0xff] }
   0xe   :  { %66 = vmatpush.msra.mxu0 %v28_v7 }
  0x10   :  { %67 = vmatpush.msra.mxu0 %v27_v8 }
  0x11   :  { %146 = vmatmul.msk.f32.vlgmr.msra.gmra.mxu0 %vm48_vm0, %v44_v9 }
  0x8e   :  { %v69_v14 = vpop.f32.mrf.mxu0 }
  0x8f   :  { %v70_v15 = vadd.f32 %v150_v13, %v69_v14 }
  0x91   :  { %v72_v16 = vmax.f32 %v70_v15, 0.0 }
  0x93   :  { %147 = vmatmul.msk.f32.vlgmr.msra.gmra.mxu1 %vm76_vm1, %v72_v16 }
 0x110   :  { %v97_v20 = vpop.f32.mrf.mxu1 }
 0x111   :  { %v98_v21 = vadd.f32 %v151_v19, %v97_v20 }
 0x113   :  { %v100_v22 = vmax.f32 %v98_v21, 0.0 }
 0x115   :  { %148 = vmatmul.msk.f32.vlgmr.msra.gmra.mxu2 %vm104_vm2, %v100_v22 }
 0x198   :  { %v125_v24 = vpop.f32.mrf.mxu2 }
 0x199   :  { %v126_v25 = vadd.f32 %v152_v23, %v125_v24 }
 0x19b   :  { %129 = vst.msk [vmem:[#allocation2] sm:$0xff] %vm128_vm3, %v126_v25 }
 0x19c   :  { %140 = dma.vmem_to_hbm [thread:$0]  %s136_s11, 128, %s138_s5, [#allocation3]  }
 0x19d   :  { %177 = dma.done.wait [#allocation3], 128  }
 0x19e   :  { %178 = vsyncadd [#allocation3], 4294967168 }
 0x19f   :  { %145 = vsyncpa [#allocation3], 1 }

</bundles_post_ra>
